<compile_context>
chip_gen: v7x
topology: tpu7x:2x2x1
jax: 0.10.0
libtpu: 0.0.40
codegen_flags: <defaults>
</compile_context>

<pallas_src>
import functools

import jax
import jax.numpy as jnp
from jax.experimental import pallas as pl
from jax.experimental.pallas import tpu as pltpu


def _clustering_kernel(z_ref, ct_ref, csq_ref, p_ref, *, alpha):
    z = z_ref[...]                                   # (TN, D), native dtype (bf16 goes straight to MXU)
    ct = ct_ref[...]                                 # (D, K), pre-transposed centroids (VMEM-resident)
    c_sq = csq_ref[...].astype(jnp.float32)          # (1, K), precomputed ||c||^2

    # ||z||^2 needs f32 (and v5e has no bf16 VPU) -> cast only for the square.
    zf = z.astype(jnp.float32)
    z_sq = jnp.sum(zf * zf, axis=-1, keepdims=True)  # (TN, 1)

    # Cross term on the MXU; the (TN, K, D) broadcast temp is never materialized.
    cross = jnp.dot(z, ct, preferred_element_type=jnp.float32)       # (TN, K)
    dist = jnp.maximum(z_sq + c_sq - 2.0 * cross, 0.0)               # clamp cancellation tail

    # Student's t numerator -- exact math (no approx reciprocals; see compile fix).
    half = (float(alpha) + 1.0) / 2.0
    if float(alpha) == 1.0:
        p_un = 1.0 / (1.0 + dist)                    # exponent is exactly -1
    elif half == round(half) and 1 <= int(round(half)) <= 4:
        base = 1.0 / (1.0 + dist / float(alpha))     # small integer power -> VPU multiplies, no EUP log/exp
        p_un = base
        for _ in range(int(round(half)) - 1):
            p_un = p_un * base
    else:
        p_un = jnp.exp(-half * jnp.log1p(dist / float(alpha)))

    # Row-normalize over clusters (dim=1) with an exact divide, then clamp(min=1e-10).
    row_sum = jnp.sum(p_un, axis=1, keepdims=True)
    p = jnp.maximum(p_un / row_sum, 1e-10)

    p_ref[...] = p.astype(p_ref.dtype)
    # q is NOT stored: target_dist() re-normalizes an already normalized p, so
    # q == p and the wrapper returns the same array twice.


def _vmem_capacity_bytes():
    """Physical VMEM of the current generation, with a conservative fallback."""
    try:
        return int(pltpu.get_tpu_info().vmem_capacity_bytes)
    except Exception:
        return 64 * 1024 * 1024   # v7x per-TensorCore physical VMEM (smallest of v5e/v6e/v7x)


def _pick_tile_n(n, d, k, z_itemsize, out_itemsize, budget_bytes):
    """Largest multiple-of-8 row tile whose pipelined VMEM footprint fits the budget."""
    # Per-row bytes: double-buffered z block, double-buffered p block, plus
    # in-kernel f32 temporaries (zf copy, cross/dist/p_un/p, z_sq).
    per_row = 2 * d * z_itemsize + 2 * k * out_itemsize + 4 * (d + 4 * k + 1)
    # Constant residents: (D, K) centroid tile and (1, K) squared norms (both double-buffered).
    fixed = 2 * (d * k * z_itemsize + k * 4)
    tile = (budget_bytes - fixed) // max(per_row, 1)
    tile = max(8, min(8192, (tile // 8) * 8))
    if n > tile:
        return tile
    if n >= 16:
        # Keep grid length >= 2 so dimension_semantics=("parallel",) can feed
        # both TensorCores on v7x (a 1-block grid silently idles one core).
        return max(8, ((pl.cdiv(n, 2) + 7) // 8) * 8)
    return n  # single block == full first dim (always a legal block shape)


def clustering_forward(z, centroids, alpha, *, tile_n=None):
    """Full ClusteringLayer forward pass as a single tiled Pallas call. Returns (p, q)."""
    n, d = z.shape
    k, dc = centroids.shape
    assert d == dc

    vmem_cap = _vmem_capacity_bytes()
    vmem_limit = min(int(0.75 * vmem_cap), 100 * 1024 * 1024)
    budget = min(int(0.40 * vmem_cap), 48 * 1024 * 1024)

    out_dtype = z.dtype
    if tile_n is None:
        tile_n = _pick_tile_n(
            n, d, k, jnp.dtype(z.dtype).itemsize, jnp.dtype(out_dtype).itemsize, budget
        )

    # Hoisted loop-invariants: pre-transposed centroids (no per-tile transpose
    # feeding the MXU) and precomputed ||c||^2 (no per-tile square/reduce).
    c_t = centroids.T                                                        # (D, K)
    c_sq = jnp.sum(centroids.astype(jnp.float32) ** 2, axis=-1)[None, :]     # (1, K)

    kernel = functools.partial(_clustering_kernel, alpha=float(alpha))
    grid = (pl.cdiv(n, tile_n),)
    itemsize = jnp.dtype(z.dtype).itemsize
    cost = pl.CostEstimate(
        flops=2 * n * k * d + 8 * n * k + 2 * n * d,
        transcendentals=2 * n * k,
        bytes_accessed=itemsize * (n * d + k * d)
        + 4 * k
        + jnp.dtype(out_dtype).itemsize * n * k,
    )

    # NOTE: with K << 128 the (tile_n, K) output stores are lane-masked; a
    # transposed (K, tile_n) lane-dense output only pays off if profiling shows
    # the store path dominating, so it is intentionally not done here.
    p = pl.pallas_call(
        kernel,
        out_shape=jax.ShapeDtypeStruct((n, k), out_dtype),
        grid=grid,
        in_specs=[
            pl.BlockSpec((tile_n, d), lambda i: (i, 0)),
            pl.BlockSpec((d, k), lambda i: (0, 0)),      # centroids stay VMEM-resident
            pl.BlockSpec((1, k), lambda i: (0, 0)),      # precomputed ||c||^2
        ],
        out_specs=pl.BlockSpec((tile_n, k), lambda i: (i, 0)),
        compiler_params=pltpu.CompilerParams(
            dimension_semantics=("parallel",),           # shards row tiles across TCs on v7x
            vmem_limit_bytes=vmem_limit,
        ),
        cost_estimate=cost,
    )(z, c_t, c_sq)

    # target_dist() overwrites q with p / rowsum(p); p is already row-normalized,
    # so q == p -> return the same array (no second store / HBM writeback).
    return p, p


def clustering_reference(z, centroids, alpha):
    """Pure-JAX reference mirroring the PyTorch module line by line."""
    dist = jnp.sum((z[:, None, :] - centroids[None, :, :]) ** 2, axis=-1)
    p = jnp.power(1.0 + dist / alpha, -(alpha + 1.0) / 2.0)
    p = p / jnp.sum(p, axis=1, keepdims=True)
    q = p / jnp.sum(p, axis=1, keepdims=True)
    p = jnp.maximum(p, 1e-10)
    q = jnp.maximum(q, 1e-10)
    return p, q


def _check(n, d, k, alpha, tile_n=None):
    key = jax.random.PRNGKey(0)
    kz, kc = jax.random.split(key)
    z = jax.random.normal(kz, (n, d), dtype=jnp.float32)
    # Deterministic stand-in for the nn.Parameter(torch.empty(n_clusters, embedding_dim)).
    centroids = jax.random.normal(kc, (k, d), dtype=jnp.float32)

    p, q = clustering_forward(z, centroids, alpha, tile_n=tile_n)
    p = jax.block_until_ready(p)
    q = jax.block_until_ready(q)

    p_ref, q_ref = clustering_reference(z, centroids, alpha)
    assert p.shape == (n, k) and q.shape == (n, k)
    # Exact divides keep the kernel within a few ulps of the reference in
    # exact-f32 arithmetic; the budget below also covers a reduced-precision
    # f32 MXU pass and the matmul-identity cancellation on real hardware.
    tol = dict(atol=2e-3, rtol=2e-3)
    assert jnp.allclose(p, p_ref, **tol), float(jnp.max(jnp.abs(p - p_ref)))
    assert jnp.allclose(q, q_ref, **tol), float(jnp.max(jnp.abs(q - q_ref)))


if __name__ == "__main__":
    # Small shapes implied by the module: N samples, D embedding dim, K clusters.
    _check(n=8, d=32, k=4, alpha=1.0)                       # alpha==1 fast path, single block
    _check(n=272, d=64, k=10, alpha=2.0, tile_n=64)          # multi-tile grid + partial block, exp/log1p path
    _check(n=300, d=128, k=16, alpha=3.0)                    # auto tile pick (grid split for 2 TCs), integer-power path
    print("KERNEL_OK")
</pallas_src>

<mosaic_0001>
module attributes {stable_mosaic.version = 11 : i64} {
  func.func @_clustering_kernel(%arg0: i32, %arg1: memref<8x32xf32, #tpu.memory_space<vmem>>, %arg2: memref<32x4xf32, #tpu.memory_space<vmem>>, %arg3: memref<1x4xf32, #tpu.memory_space<vmem>>, %arg4: memref<8x4xf32, #tpu.memory_space<vmem>>) attributes {dimension_semantics = [#tpu.dimension_semantics<parallel>], iteration_bounds = array<i64: 1>, scalar_prefetch = 0 : i64, scratch_operands = 0 : i64, tpu.core_type = #tpu.core_type<tc>, window_params = [{transform_indices = @transform_0, window_bounds = array<i64: 8, 32>}, {pipeline_mode = #tpu.pipeline_mode<synchronous>, transform_indices = @transform_1, window_bounds = array<i64: 32, 4>}, {pipeline_mode = #tpu.pipeline_mode<synchronous>, transform_indices = @transform_2, window_bounds = array<i64: 1, 4>}, {transform_indices = @transform_3, window_bounds = array<i64: 8, 4>}]} {
    %c0 = arith.constant 0 : index
    %c0_0 = arith.constant 0 : index
    %0 = vector.load %arg1[%c0, %c0_0] : memref<8x32xf32, #tpu.memory_space<vmem>>, vector<8x32xf32>
    %c0_1 = arith.constant 0 : index
    %c0_2 = arith.constant 0 : index
    %1 = vector.load %arg2[%c0_1, %c0_2] : memref<32x4xf32, #tpu.memory_space<vmem>>, vector<32x4xf32>
    %c0_3 = arith.constant 0 : index
    %c0_4 = arith.constant 0 : index
    %2 = vector.load %arg3[%c0_3, %c0_4] : memref<1x4xf32, #tpu.memory_space<vmem>>, vector<1x4xf32>
    %3 = arith.mulf %0, %0 : vector<8x32xf32>
    %cst = arith.constant dense<0.000000e+00> : vector<8xf32>
    %4 = vector.multi_reduction <add>, %3, %cst [1] : vector<8x32xf32> to vector<8xf32>
    %5 = vector.shape_cast %4 : vector<8xf32> to vector<8x1xf32>
    %cst_5 = arith.constant dense<0.000000e+00> : vector<8x4xf32>
    %6 = tpu.matmul %0, %1, %cst_5 {dimension_numbers = #tpu.dot_dimension_numbers<[1], [0], [0], [1], [0, 0, 1, 1], [], []>} : vector<8x32xf32>, vector<32x4xf32>, vector<8x4xf32> -> vector<8x4xf32>
    %7 = vector.broadcast %5 : vector<8x1xf32> to vector<8x4xf32>
    %8 = vector.broadcast %2 : vector<1x4xf32> to vector<8x4xf32>
    %9 = arith.addf %7, %8 : vector<8x4xf32>
    %cst_6 = arith.constant 2.000000e+00 : f32
    %10 = vector.broadcast %cst_6 : f32 to vector<8x4xf32>
    %11 = arith.mulf %10, %6 : vector<8x4xf32>
    %12 = arith.subf %9, %11 : vector<8x4xf32>
    %cst_7 = arith.constant 0.000000e+00 : f32
    %13 = vector.broadcast %cst_7 : f32 to vector<8x4xf32>
    %14 = arith.maximumf %12, %13 : vector<8x4xf32>
    %cst_8 = arith.constant 1.000000e+00 : f32
    %15 = vector.broadcast %cst_8 : f32 to vector<8x4xf32>
    %16 = arith.addf %15, %14 : vector<8x4xf32>
    %cst_9 = arith.constant 1.000000e+00 : f32
    %17 = vector.broadcast %cst_9 : f32 to vector<8x4xf32>
    %18 = arith.divf %17, %16 : vector<8x4xf32>
    %cst_10 = arith.constant dense<0.000000e+00> : vector<8xf32>
    %19 = vector.multi_reduction <add>, %18, %cst_10 [1] : vector<8x4xf32> to vector<8xf32>
    %20 = vector.shape_cast %19 : vector<8xf32> to vector<8x1xf32>
    %21 = vector.broadcast %20 : vector<8x1xf32> to vector<8x4xf32>
    %22 = arith.divf %18, %21 : vector<8x4xf32>
    %cst_11 = arith.constant 1.000000e-10 : f32
    %23 = vector.broadcast %cst_11 : f32 to vector<8x4xf32>
    %24 = arith.maximumf %22, %23 : vector<8x4xf32>
    %c0_12 = arith.constant 0 : index
    %c0_13 = arith.constant 0 : index
    %25 = vector.load %arg4[%c0_12, %c0_13] : memref<8x4xf32, #tpu.memory_space<vmem>>, vector<8x4xf32>
    tpu.vector_store %arg4[%c0_12, %c0_13], %24 {strides = array<i32>} : memref<8x4xf32, #tpu.memory_space<vmem>>, vector<8x4xf32>,
    return
  }
  func.func @transform_0(%arg0: i32) -> (i32, i32) {
    %c0_i32 = arith.constant 0 : i32
    %c0_i32_0 = arith.constant 0 : i32
    return %arg0, %c0_i32 : i32, i32
  }
  func.func @transform_1(%arg0: i32) -> (i32, i32) {
    %c0_i32 = arith.constant 0 : i32
    %c0_i32_0 = arith.constant 0 : i32
    %c0_i32_1 = arith.constant 0 : i32
    return %c0_i32, %c0_i32_0 : i32, i32
  }
  func.func @transform_2(%arg0: i32) -> (i32, i32) {
    %c0_i32 = arith.constant 0 : i32
    %c0_i32_0 = arith.constant 0 : i32
    %c0_i32_1 = arith.constant 0 : i32
    return %c0_i32, %c0_i32_0 : i32, i32
  }
  func.func @transform_3(%arg0: i32) -> (i32, i32) {
    %c0_i32 = arith.constant 0 : i32
    %c0_i32_0 = arith.constant 0 : i32
    return %arg0, %c0_i32 : i32, i32
  }
}

</mosaic_0001>

<bundles_post_ra>
// kernel: tpu_custom_call.1
= control target key start
LH: loop header
LB: loop body
LE: loop exit
PB: predicated region body
PF: predicated region fallthrough
CT: control target
= control target key end

     0   :  { %v154_v0 = vmov 0.0|0.0   ;;  %vm155_vm0 = vmmov 0   ;;  %v156_v4 = vmov 0.0   ;;  %vm21_vm1 = vcmask 261120   ;;  %s198_s1 = inlined_call_operand.vmem [shape: f32[32,4], index: 1, kind: input, shape index: {}]   ;;  %s199_s0 = inlined_call_operand.vmem [shape: f32[8,32], index: 0, kind: input, shape index: {}]   ;;  %s200_s2 = inlined_call_operand.vmem [shape: f32[1,4], index: 2, kind: input, shape index: {}]   ;;  %s201_s3 = inlined_call_operand.vmem [shape: f32[8,4], index: 3, kind: output, shape index: {}]  }
   0x1   :  { %141 = vmatprep.subr.bf16.mxu0 %v154_v0  ;;  %v15_v1 = vld [vmem:[%s198_s1] sm:$0xff]  ;;  %v16_v2 = vld [vmem:[%s198_s1 + $0x8] sm:$0xff]  ;;  %v17_v3 = vld [vmem:[%s198_s1 + $0x10] sm:$0xff]  ;;  %138 = vmatprep.mubr.msk.f32.mxu0 %vm155_vm0, %v156_v4  ;;  %vm111_vm2 = vcmask 31744  }
   0x2   :  { %v142_v5 = vpack.c.bf16 %v16_v2, %v15_v1  ;;  %v18_v6 = vld [vmem:[%s198_s1 + $0x18] sm:$0xff]  ;;  %v14_v7 = vld [vmem:[%s199_s0] sm:$0xff] }
   0x3   :  { %v20_v8 = vmul.f32 %v14_v7, %v14_v7  ;;  %v145_v9 = vpack.c.bf16 %v18_v6, %v17_v3  ;;  %v124_v11 = vld [vmem:[%s200_s2] ss:$0 sm:$0xff] }
   0x4   :  { %143 = vmatpush3.bf16.msra.mxu0 %v142_v5 }
   0x5   :  { %144 = vmatprep.subr.bf16.mxu0 %v154_v0  ;;  %v22_v10 = vsel %vm21_vm1, %v20_v8, 0.0 }
   0x6   :  { %23 = vadd.xlane.f32.xlu0 %v22_v10 }
   0x8   :  { %146 = vmatpush3.bf16.msra.mxu0 %v145_v9 }
   0xb   :  { %139 = vmatmul.mubr.msk.f32.vlgmr.msra.gmra.mrb[0].mxu0 %vm21_vm1, %v14_v7 }
  0x93   :  { %v24_v12 = vpop.xlane.xlu0 %23 }
  0x94   :  { %v104_v13 = vadd.f32 %v124_v11, %v24_v12 }
  0xde   :  { %v94_v14 = vpop.f32.mrb[0].mxu0 }
  0xdf   :  { %v105_v15 = vmul.f32 2.0, %v94_v14  ;;  %v140_v16 = vpop.f32.mrb[1].mxu0 }
  0xe1   :  { %v106_v17 = vsub.f32 %v104_v13, %v105_v15 }
  0xe3   :  { %v107_v18 = vmax.f32 %v106_v17, 0.0 }
  0xe5   :  { %v108_v19 = vadd.f32 1.0, %v107_v18 }
  0xe7   :  { %150 = vrcp.f32 %v108_v19 }
  0xf1   :  { %v151_v20 = vpop.eup %150 }
  0xf2   :  { %v112_v21 = vsel %vm111_vm2, %v151_v20, 0.0 }
  0xf3   :  { %113 = vadd.xlane.f32.xlu0 %v112_v21 }
 0x180   :  { %v114_v22 = vpop.xlane.xlu0 %113 }
 0x181   :  { %152 = vrcp.f32 %v114_v22 }
 0x18b   :  { %v153_v23 = vpop.eup %152 }
 0x18c   :  { %v116_v24 = vmul.f32 %v153_v23, %v151_v20 }
 0x18e   :  { %v117_v25 = vmax.f32 %v116_v24, 1e-10 }
 0x190   :  { %118 = vst.msk [vmem:[%s201_s3] sm:$0xff] %vm111_vm2, %v117_v25 }

</bundles_post_ra>
